<compile_context>
chip_gen: v7x
topology: tpu7x:2x2x1
jax: 0.10.0
libtpu: 0.0.40
codegen_flags: <defaults>
</compile_context>

<pallas_src>
import functools
import math

import jax
import jax.numpy as jnp
from jax.experimental import pallas as pl
from jax.experimental.pallas import tpu as pltpu

LANE = 128            # pad hidden feature dims to this (bump to 256 on v6e/v7x if dims grow)
MAX_BATCH_TILE = 256  # batch tile for large B (multiple of 8 f32 sublanes)


def _round_up(n, m):
    return ((n + m - 1) // m) * m


def _pad2d(a, shape):
    pr, pc = shape[0] - a.shape[0], shape[1] - a.shape[1]
    if pr == 0 and pc == 0:
        return a
    return jnp.pad(a, ((0, pr), (0, pc)))


def _fused_mlp_kernel(*refs, num_layers):
    # refs = (x_tile, w0, b0, w1, b1, ..., w_{L-1}, b_{L-1}, out_tile); all resident in VMEM.
    x_ref, out_ref = refs[0], refs[-1]
    h = x_ref[...].astype(jnp.float32)
    for i in range(num_layers):
        w = refs[1 + 2 * i][...]                      # bf16, lane-padded
        b = refs[2 + 2 * i][...].astype(jnp.float32)  # f32, lane-padded
        # bf16 x bf16 -> f32 accumulate on the MXU; epilogue stays on the f32 accumulator.
        h = jnp.dot(h.astype(w.dtype), w, preferred_element_type=jnp.float32) + b
        if i != num_layers - 1:
            h = jnp.maximum(h, 0.0)  # ReLU
    out_ref[...] = h.astype(out_ref.dtype)


def init_mlp_params(key, input_dim, h_sizes, output_dim, dtype=jnp.float32):
    """Unpadded f32 params mimicking nn.Linear default init (uniform +-1/sqrt(fan_in)).
    Weights stored as [in_features, out_features] (transposed vs PyTorch)."""
    dims = [input_dim] + list(h_sizes) + [output_dim]
    params = []
    for i in range(len(dims) - 1):
        fan_in, fan_out = dims[i], dims[i + 1]
        key, kw, kb = jax.random.split(key, 3)
        bound = 1.0 / math.sqrt(fan_in)
        w = jax.random.uniform(kw, (fan_in, fan_out), dtype, minval=-bound, maxval=bound)
        b = jax.random.uniform(kb, (fan_out,), dtype, minval=-bound, maxval=bound)
        params.append((w, b))
    return params


def pack_mlp_params(params, lane=LANE, weight_dtype=jnp.bfloat16):
    """ONE-TIME packing: zero-pad hidden dims to lane multiples, cast weights to bf16.

    The true input dim (first weight) and true output dim (last weight/bias) are kept
    unpadded so no per-call padding of x or slicing of the output is needed.
    """
    dims = [params[0][0].shape[0]] + [w.shape[1] for w, _ in params]
    num_layers = len(params)
    packed = []
    for i, (w, b) in enumerate(params):
        in_d = dims[i] if i == 0 else _round_up(dims[i], lane)
        out_d = dims[i + 1] if i == num_layers - 1 else _round_up(dims[i + 1], lane)
        wp = _pad2d(w, (in_d, out_d)).astype(weight_dtype)
        bp = _pad2d(b.reshape(1, -1), (1, out_d)).astype(jnp.float32)
        packed.append((wp, bp))
    return packed


def mlp_forward(packed_params, x, *, batch_tile=MAX_BATCH_TILE):
    """Fused MLP forward; matches MLP.forward. Returns (x_out, x_temp) like the module."""
    B, Din = x.shape
    num_layers = len(packed_params)
    out_dim = packed_params[-1][0].shape[1]

    # Batch tiling: single full block for small B (no padding at all); otherwise tiles of
    # `batch_tile` rows (padding only in the rare non-divisible large-batch case).
    if B <= batch_tile:
        TM, B_run, x_run = B, B, x
    else:
        TM = batch_tile
        B_run = _round_up(B, TM)
        x_run = x if B_run == B else jnp.pad(x, ((0, B_run - B), (0, 0)))
    grid = (B_run // TM,)

    inputs = [x_run]
    in_specs = [pl.BlockSpec((TM, Din), lambda i: (i, 0))]
    for (w, b) in packed_params:
        inputs += [w, b]
        in_specs += [pl.BlockSpec(tuple(w.shape), lambda i: (0, 0)),   # resident weights
                     pl.BlockSpec(tuple(b.shape), lambda i: (0, 0))]   # resident biases

    # VMEM budget: resident params + double-buffered x/out tiles + f32 intermediates.
    param_bytes = sum(int(a.size) * a.dtype.itemsize
                      for (w, b) in packed_params for a in (w, b))
    widest = max(int(w.shape[1]) for w, _ in packed_params)
    io_bytes = 2 * (TM * Din + TM * out_dim) * x.dtype.itemsize
    act_bytes = 4 * TM * widest * 4
    vmem_limit = int(min(max(2 * (param_bytes + io_bytes + act_bytes), 16 << 20), 64 << 20))

    # Advisory cost estimate so XLA schedules the custom call sensibly.
    kn = sum(int(w.shape[0]) * int(w.shape[1]) for w, _ in packed_params)
    flops = 2 * B_run * kn
    bytes_accessed = B_run * Din * x.dtype.itemsize + param_bytes + B_run * out_dim * 4

    out = pl.pallas_call(
        functools.partial(_fused_mlp_kernel, num_layers=num_layers),
        out_shape=jax.ShapeDtypeStruct((B_run, out_dim), x.dtype),
        grid=grid,
        in_specs=in_specs,
        out_specs=pl.BlockSpec((TM, out_dim), lambda i: (i, 0)),
        compiler_params=pltpu.CompilerParams(
            dimension_semantics=("parallel",),          # shard batch tiles across TCs (v7x)
            vmem_limit_bytes=vmem_limit),
        cost_estimate=pl.CostEstimate(flops=flops, transcendentals=0,
                                      bytes_accessed=bytes_accessed),
    )(*inputs)

    y = out if B_run == B else out[:B]
    x_temp = y  # mirrors the PyTorch module's (x, x_temp) aliasing
    return y, x_temp


# TODO(synk): get_network_jacobian (torch.autograd.grad loop) — pl.pallas_call has no autodiff
# rule, so jax.jacrev must run over a pure-JAX forward (or the kernel must get a custom_vjp);
# batching the output-dim seeds into M would also fill the MXU rows.


if __name__ == "__main__":
    # Small shapes consistent with the module: MLP(input_dim=16, h_sizes=[32, 32], output_dim=8)
    input_dim, h_sizes, output_dim = 16, [32, 32], 8
    batch = 2

    key = jax.random.PRNGKey(0)
    kparams, kx = jax.random.split(key)
    params = init_mlp_params(kparams, input_dim, h_sizes, output_dim)
    packed = pack_mlp_params(params)  # one-time pad + bf16 cast (not per call)
    x = jax.random.normal(kx, (batch, input_dim), dtype=jnp.float32)

    fwd = jax.jit(mlp_forward)
    y, y_temp = fwd(packed, x)
    jax.block_until_ready(y)
    jax.block_until_ready(y_temp)

    # Reference 1: same bf16-operand math (tight tolerance).
    def ref_forward_bf16(packed_params, x):
        h = x
        for i, (w, b) in enumerate(packed_params):
            h = jnp.dot(h.astype(w.dtype), w, preferred_element_type=jnp.float32) + b
            if i != len(packed_params) - 1:
                h = jnp.maximum(h, 0.0)
        return h

    # Reference 2: pure f32 forward on the unpadded params (loose tolerance, bf16 operands).
    def ref_forward_f32(params, x):
        h = x
        for i, (w, b) in enumerate(params):
            h = h @ w + b
            if i != len(params) - 1:
                h = jnp.maximum(h, 0.0)
        return h

    y_ref_bf16 = ref_forward_bf16(packed, x)
    y_ref_f32 = ref_forward_f32(params, x)

    assert y.shape == (batch, output_dim)
    assert jnp.allclose(y, y_ref_bf16, atol=1e-4, rtol=1e-4)
    assert jnp.allclose(y, y_ref_f32, atol=3e-2, rtol=3e-2)
    assert jnp.allclose(y, y_temp)

    print("KERNEL_OK")
</pallas_src>

<mosaic_0001>
module attributes {stable_mosaic.version = 11 : i64} {
  func.func @_fused_mlp_kernel(%arg0: i32, %arg1: memref<2x16xf32, #tpu.memory_space<vmem>>, %arg2: memref<16x128xbf16, #tpu.memory_space<vmem>>, %arg3: memref<1x128xf32, #tpu.memory_space<vmem>>, %arg4: memref<128x128xbf16, #tpu.memory_space<vmem>>, %arg5: memref<1x128xf32, #tpu.memory_space<vmem>>, %arg6: memref<128x8xbf16, #tpu.memory_space<vmem>>, %arg7: memref<1x8xf32, #tpu.memory_space<vmem>>, %arg8: memref<2x8xf32, #tpu.memory_space<vmem>>) attributes {dimension_semantics = [#tpu.dimension_semantics<parallel>], iteration_bounds = array<i64: 1>, scalar_prefetch = 0 : i64, scratch_operands = 0 : i64, tpu.core_type = #tpu.core_type<tc>, window_params = [{transform_indices = @transform_0, window_bounds = array<i64: 2, 16>}, {pipeline_mode = #tpu.pipeline_mode<synchronous>, transform_indices = @transform_1, window_bounds = array<i64: 16, 128>}, {pipeline_mode = #tpu.pipeline_mode<synchronous>, transform_indices = @transform_2, window_bounds = array<i64: 1, 128>}, {pipeline_mode = #tpu.pipeline_mode<synchronous>, transform_indices = @transform_3, window_bounds = array<i64: 128, 128>}, {pipeline_mode = #tpu.pipeline_mode<synchronous>, transform_indices = @transform_4, window_bounds = array<i64: 1, 128>}, {pipeline_mode = #tpu.pipeline_mode<synchronous>, transform_indices = @transform_5, window_bounds = array<i64: 128, 8>}, {pipeline_mode = #tpu.pipeline_mode<synchronous>, transform_indices = @transform_6, window_bounds = array<i64: 1, 8>}, {transform_indices = @transform_7, window_bounds = array<i64: 2, 8>}]} {
    %c0 = arith.constant 0 : index
    %c0_0 = arith.constant 0 : index
    %0 = vector.load %arg1[%c0, %c0_0] : memref<2x16xf32, #tpu.memory_space<vmem>>, vector<2x16xf32>
    %c0_1 = arith.constant 0 : index
    %c0_2 = arith.constant 0 : index
    %1 = vector.load %arg2[%c0_1, %c0_2] : memref<16x128xbf16, #tpu.memory_space<vmem>>, vector<16x128xbf16>
    %c0_3 = arith.constant 0 : index
    %c0_4 = arith.constant 0 : index
    %2 = vector.load %arg3[%c0_3, %c0_4] : memref<1x128xf32, #tpu.memory_space<vmem>>, vector<1x128xf32>
    %3 = arith.truncf %0 : vector<2x16xf32> to vector<2x16xbf16>
    %cst = arith.constant dense<0.000000e+00> : vector<2x128xf32>
    %4 = tpu.matmul %3, %1, %cst {dimension_numbers = #tpu.dot_dimension_numbers<[1], [0], [0], [1], [0, 0, 1, 1], [], []>} : vector<2x16xbf16>, vector<16x128xbf16>, vector<2x128xf32> -> vector<2x128xf32>
    %5 = vector.broadcast %2 : vector<1x128xf32> to vector<2x128xf32>
    %6 = arith.addf %4, %5 : vector<2x128xf32>
    %cst_5 = arith.constant 0.000000e+00 : f32
    %7 = vector.broadcast %cst_5 : f32 to vector<2x128xf32>
    %8 = arith.maximumf %6, %7 : vector<2x128xf32>
    %c0_6 = arith.constant 0 : index
    %c0_7 = arith.constant 0 : index
    %9 = vector.load %arg4[%c0_6, %c0_7] : memref<128x128xbf16, #tpu.memory_space<vmem>>, vector<128x128xbf16>
    %c0_8 = arith.constant 0 : index
    %c0_9 = arith.constant 0 : index
    %10 = vector.load %arg5[%c0_8, %c0_9] : memref<1x128xf32, #tpu.memory_space<vmem>>, vector<1x128xf32>
    %11 = arith.truncf %8 : vector<2x128xf32> to vector<2x128xbf16>
    %cst_10 = arith.constant dense<0.000000e+00> : vector<2x128xf32>
    %12 = tpu.matmul %11, %9, %cst_10 {dimension_numbers = #tpu.dot_dimension_numbers<[1], [0], [0], [1], [0, 0, 1, 1], [], []>} : vector<2x128xbf16>, vector<128x128xbf16>, vector<2x128xf32> -> vector<2x128xf32>
    %13 = vector.broadcast %10 : vector<1x128xf32> to vector<2x128xf32>
    %14 = arith.addf %12, %13 : vector<2x128xf32>
    %cst_11 = arith.constant 0.000000e+00 : f32
    %15 = vector.broadcast %cst_11 : f32 to vector<2x128xf32>
    %16 = arith.maximumf %14, %15 : vector<2x128xf32>
    %c0_12 = arith.constant 0 : index
    %c0_13 = arith.constant 0 : index
    %17 = vector.load %arg6[%c0_12, %c0_13] : memref<128x8xbf16, #tpu.memory_space<vmem>>, vector<128x8xbf16>
    %c0_14 = arith.constant 0 : index
    %c0_15 = arith.constant 0 : index
    %18 = vector.load %arg7[%c0_14, %c0_15] : memref<1x8xf32, #tpu.memory_space<vmem>>, vector<1x8xf32>
    %19 = arith.truncf %16 : vector<2x128xf32> to vector<2x128xbf16>
    %cst_16 = arith.constant dense<0.000000e+00> : vector<2x8xf32>
    %20 = tpu.matmul %19, %17, %cst_16 {dimension_numbers = #tpu.dot_dimension_numbers<[1], [0], [0], [1], [0, 0, 1, 1], [], []>} : vector<2x128xbf16>, vector<128x8xbf16>, vector<2x8xf32> -> vector<2x8xf32>
    %21 = vector.broadcast %18 : vector<1x8xf32> to vector<2x8xf32>
    %22 = arith.addf %20, %21 : vector<2x8xf32>
    %c0_17 = arith.constant 0 : index
    %c0_18 = arith.constant 0 : index
    %23 = vector.load %arg8[%c0_17, %c0_18] : memref<2x8xf32, #tpu.memory_space<vmem>>, vector<2x8xf32>
    tpu.vector_store %arg8[%c0_17, %c0_18], %22 {strides = array<i32>} : memref<2x8xf32, #tpu.memory_space<vmem>>, vector<2x8xf32>,
    return
  }
  func.func @transform_0(%arg0: i32) -> (i32, i32) {
    %c0_i32 = arith.constant 0 : i32
    %c0_i32_0 = arith.constant 0 : i32
    return %arg0, %c0_i32 : i32, i32
  }
  func.func @transform_1(%arg0: i32) -> (i32, i32) {
    %c0_i32 = arith.constant 0 : i32
    %c0_i32_0 = arith.constant 0 : i32
    %c0_i32_1 = arith.constant 0 : i32
    return %c0_i32, %c0_i32_0 : i32, i32
  }
  func.func @transform_2(%arg0: i32) -> (i32, i32) {
    %c0_i32 = arith.constant 0 : i32
    %c0_i32_0 = arith.constant 0 : i32
    %c0_i32_1 = arith.constant 0 : i32
    return %c0_i32, %c0_i32_0 : i32, i32
  }
  func.func @transform_3(%arg0: i32) -> (i32, i32) {
    %c0_i32 = arith.constant 0 : i32
    %c0_i32_0 = arith.constant 0 : i32
    %c0_i32_1 = arith.constant 0 : i32
    return %c0_i32, %c0_i32_0 : i32, i32
  }
  func.func @transform_4(%arg0: i32) -> (i32, i32) {
    %c0_i32 = arith.constant 0 : i32
    %c0_i32_0 = arith.constant 0 : i32
    %c0_i32_1 = arith.constant 0 : i32
    return %c0_i32, %c0_i32_0 : i32, i32
  }
  func.func @transform_5(%arg0: i32) -> (i32, i32) {
    %c0_i32 = arith.constant 0 : i32
    %c0_i32_0 = arith.constant 0 : i32
    %c0_i32_1 = arith.constant 0 : i32
    return %c0_i32, %c0_i32_0 : i32, i32
  }
  func.func @transform_6(%arg0: i32) -> (i32, i32) {
    %c0_i32 = arith.constant 0 : i32
    %c0_i32_0 = arith.constant 0 : i32
    %c0_i32_1 = arith.constant 0 : i32
    return %c0_i32, %c0_i32_0 : i32, i32
  }
  func.func @transform_7(%arg0: i32) -> (i32, i32) {
    %c0_i32 = arith.constant 0 : i32
    %c0_i32_0 = arith.constant 0 : i32
    return %arg0, %c0_i32 : i32, i32
  }
}

</mosaic_0001>

<bundles_post_ra>
// kernel: mlp_forward.1
= control target key start
LH: loop header
LB: loop body
LE: loop exit
PB: predicated region body
PF: predicated region fallthrough
CT: control target
= control target key end

     0   :  { %12 = vsyncpa [#allocation3], 0  ;;  %s464_s24 = smov [#allocation2]   ;;  %s602_s0 = inlined_call_operand.vmem [shape: f32[2,16], index: 0, kind: input, shape index: {}]   ;;  %s603_s1 = inlined_call_operand.vmem [shape: bf16[16,128], index: 1, kind: input, shape index: {}]   ;;  %s604_s2 = inlined_call_operand.vmem [shape: f32[1,128], index: 2, kind: input, shape index: {}]   ;;  %s605_s3 = inlined_call_operand.vmem [shape: bf16[128,128], index: 3, kind: input, shape index: {}]   ;;  %s606_s4 = inlined_call_operand.hbm [shape: f32[1,128], index: 4, kind: input, shape index: {}]   ;;  %s607_s5 = inlined_call_operand.vmem [shape: bf16[128,8], index: 5, kind: input, shape index: {}]   ;;  %s608_s6 = inlined_call_operand.vmem [shape: f32[1,8], index: 6, kind: input, shape index: {}]   ;;  %s609_s7 = inlined_call_operand.vmem [shape: f32[2,8], index: 7, kind: output, shape index: {}]  }
   0x1   :  { %s27_s25 = sshll.u32 %s464_s24, 4  ;;  %s440_s28 = scalar_lea.hbm %s606_s4, 16  ;;  %s28_s25 = int_to_ptr.vmem [resolvable:$true] %s27_s25 }
   0x2   :  { %p441_p0 = scmp.ne.s32.totalorder %s606_s4, %s440_s28  ;;  %p444_p1 = scmp.lt.u32.totalorder %s440_s28, %s606_s4 }
   0x4   :  { %p446_p2 = pnand %p444_p1, %p441_p0 }
   0x6   :  { %449 = shalt.err (!%p446_p2)
}
   0x7   :  { %s450_s10 = scalar_lea.vmem %s28_s25, 16  ;;  %s454_s11 = scalar_lea.vmem %s28_s25, 32 }
   0x8   :  { %p451_p3 = scmp.ne.s32.totalorder %s28_s25, %s450_s10  ;;  %p455_p4 = scmp.lt.s32.totalorder %s28_s25, %s28_s25 }
   0x9   :  { %p456_p5 = scmp.lt.s32.totalorder %s454_s11, %s450_s10 }
   0xb   :  { %p457_p6 = por %p456_p5, %p455_p4 }
   0xd   :  { %p458_p7 = pnand %p457_p6, %p451_p3 }
   0xf   :  { %461 = shalt.err (!%p458_p7)
}
  0x10   :  { %30 = dma.hbm_to_vmem [thread:$0]  %s606_s4, 16, %s28_s25, [#allocation3]  }
  0x11   :  { %462 = dma.done.wait [#allocation3], 16  }
  0x12   :  { %463 = vsyncadd [#allocation3], 4294967280  ;;  %v465_v0 = vmov 0.0   ;;  %vm466_vm0 = vmmov 0   ;;  %v423_v1 = vld [vmem:[%s603_s1] sm:$0xff]   ;;  %vm56_vm1 = vcmask 130048  }
  0x13   :  { %374 = vmatprep.subr.bf16.mxu0 %v465_v0  ;;  %376 = vmatprep.mubr.msk.bf16.mxu0 %vm466_vm0, %v465_v0  ;;  %v39_v2 = vld [vmem:[%s602_s0] sm:$0x3]  ;;  %v425_v5 = vld [vmem:[%s605_s3 + $0x8] sm:$0xff]   ;;  %v426_v6 = vld [vmem:[%s605_s3 + $0x10] sm:$0xff]   ;;  %vm326_vm2 = vcmask 58368  }
  0x14   :  { %380 = vmatprep.subr.bf16.mxu1 %v465_v0  ;;  %396 = vmatprep.mubr.msk.bf16.mxu1 %vm466_vm0, %v465_v0  ;;  %v43_v3 = vpack.c.bf16 %v39_v2, %v39_v2  ;;  %v424_v4 = vld [vmem:[%s605_s3] sm:$0xff]   ;;  %v427_v7 = vld [vmem:[%s605_s3 + $0x18] sm:$0xff]   ;;  %v429_v9 = vld [vmem:[%s605_s3 + $0x28] sm:$0xff]  }
  0x15   :  { %375 = vmatpush3.bf16.msra.mxu0 %v423_v1  ;;  %381 = vmatpush3.bf16.msra.mxu1 %v424_v4  ;;  %v428_v8 = vld [vmem:[%s605_s3 + $0x20] sm:$0xff]   ;;  %v430_v10 = vld [vmem:[%s605_s3 + $0x30] sm:$0xff]   ;;  %v431_v11 = vld [vmem:[%s605_s3 + $0x38] sm:$0xff]  }
  0x16   :  { %400 = vmatprep.subr.bf16.mxu0 %v465_v0  ;;  %382 = vmatprep.subr.bf16.mxu1 %v465_v0  ;;  %v432_v12 = vld [vmem:[%s607_s5] sm:$0xff]   ;;  %v433_v13 = vld [vmem:[%s607_s5 + $0x8] sm:$0xff]   ;;  %v434_v14 = vld [vmem:[%s607_s5 + $0x10] sm:$0xff]  }
  0x17   :  { %v435_v15 = vld [vmem:[%s607_s5 + $0x18] sm:$0xff]   ;;  %v436_v16 = vld [vmem:[%s607_s5 + $0x20] sm:$0xff]   ;;  %v437_v17 = vld [vmem:[%s607_s5 + $0x28] sm:$0xff]  }
  0x18   :  { %377 = vmatmul.mubr.msk.bf16.vlgmr.msra.gmra.mrb[0].mxu0 %vm56_vm1, %v43_v3  ;;  %v333_v18 = vld [vmem:[%s604_s2] ss:$0 sm:$0xff]  ;;  %v438_v26 = vld [vmem:[%s607_s5 + $0x30] sm:$0xff]   ;;  %v439_v27 = vld [vmem:[%s607_s5 + $0x38] sm:$0xff]  }
  0x19   :  { %416 = vmatprep.mubr.msk.bf16.mxu0 %vm466_vm0, %v465_v0  ;;  %383 = vmatpush3.bf16.msra.mxu1 %v425_v5  ;;  %v336_v28 = vld [vmem:[#allocation2] ss:$0 sm:$0xff] }
  0x1a   :  { %384 = vmatprep.subr.bf16.mxu1 %v465_v0  ;;  %401 = vmatpush3.bf16.msra.mxu0 %v432_v12  ;;  %v345_v36 = vld [vmem:[%s608_s6] ss:$0 sm:$0xff] }
  0x1b   :  { %402 = vmatprep.subr.bf16.mxu0 %v465_v0 }
  0x1d   :  { %385 = vmatpush3.bf16.msra.mxu1 %v426_v6 }
  0x1e   :  { %386 = vmatprep.subr.bf16.mxu1 %v465_v0  ;;  %403 = vmatpush3.bf16.msra.mxu0 %v433_v13 }
  0x1f   :  { %404 = vmatprep.subr.bf16.mxu0 %v465_v0 }
  0x21   :  { %387 = vmatpush3.bf16.msra.mxu1 %v427_v7 }
  0x22   :  { %388 = vmatprep.subr.bf16.mxu1 %v465_v0  ;;  %405 = vmatpush3.bf16.msra.mxu0 %v434_v14 }
  0x23   :  { %406 = vmatprep.subr.bf16.mxu0 %v465_v0 }
  0x25   :  { %389 = vmatpush3.bf16.msra.mxu1 %v428_v8 }
  0x26   :  { %390 = vmatprep.subr.bf16.mxu1 %v465_v0  ;;  %407 = vmatpush3.bf16.msra.mxu0 %v435_v15 }
  0x27   :  { %408 = vmatprep.subr.bf16.mxu0 %v465_v0 }
  0x29   :  { %391 = vmatpush3.bf16.msra.mxu1 %v429_v9 }
  0x2a   :  { %392 = vmatprep.subr.bf16.mxu1 %v465_v0  ;;  %409 = vmatpush3.bf16.msra.mxu0 %v436_v16 }
  0x2b   :  { %410 = vmatprep.subr.bf16.mxu0 %v465_v0 }
  0x2d   :  { %393 = vmatpush3.bf16.msra.mxu1 %v430_v10 }
  0x2e   :  { %394 = vmatprep.subr.bf16.mxu1 %v465_v0  ;;  %411 = vmatpush3.bf16.msra.mxu0 %v437_v17 }
  0x2f   :  { %412 = vmatprep.subr.bf16.mxu0 %v465_v0 }
  0x31   :  { %395 = vmatpush3.bf16.msra.mxu1 %v431_v11 }
  0x32   :  { %413 = vmatpush3.bf16.msra.mxu0 %v438_v26 }
  0x33   :  { %414 = vmatprep.subr.bf16.mxu0 %v465_v0 }
  0x36   :  { %415 = vmatpush3.bf16.msra.mxu0 %v439_v27 }
  0xeb   :  { %v94_v19 = vpop.f32.mrb[0].mxu0 }
  0xec   :  { %v95_v20 = vadd.f32 %v333_v18, %v94_v19  ;;  %v378_v21 = vpop.f32.mrb[1].mxu0 }
  0xed   :  { %v97_v22 = vpop.f32.mrb[2].mxu0 }
  0xee   :  { %v100_v23 = vmax.f32 %v95_v20, 0.0  ;;  %v379_v24 = vpop.f32.mrb[3].mxu0 }
  0xf0   :  { %v118_v25 = vpack.c.bf16 %v100_v23, %v100_v23 }
  0xf2   :  { %397 = vmatmul.mubr.bf16.vlgmr.msra.gmra.mrb[0].mxu1 %v118_v25 }
 0x1c5   :  { %v207_v29 = vpop.f32.mrb[0].mxu1 }
 0x1c6   :  { %v208_v30 = vadd.f32 %v336_v28, %v207_v29  ;;  %v398_v31 = vpop.f32.mrb[1].mxu1 }
 0x1c7   :  { %v210_v32 = vpop.f32.mrb[2].mxu1 }
 0x1c8   :  { %v213_v33 = vmax.f32 %v208_v30, 0.0  ;;  %v399_v34 = vpop.f32.mrb[3].mxu1 }
 0x1ca   :  { %v231_v35 = vpack.c.bf16 %v213_v33, %v213_v33 }
 0x1cc   :  { %417 = vmatmul.mubr.bf16.vlgmr.msra.gmra.mrb[4].mxu0 %v231_v35 }
 0x29f   :  { %v320_v37 = vpop.f32.mrb[4].mxu0 }
 0x2a0   :  { %v321_v38 = vadd.f32 %v345_v36, %v320_v37  ;;  %v418_v39 = vpop.f32.mrb[5].mxu0 }
 0x2a1   :  { %v323_v40 = vpop.f32.mrb[6].mxu0 }
 0x2a2   :  { %327 = vst.msk [vmem:[%s609_s7] sm:$0x3] %vm326_vm2, %v321_v38  ;;  %v419_v41 = vpop.f32.mrb[7].mxu0 }
 0x2a3   :  { %332 = vsyncpa [#allocation3], 1 }

</bundles_post_ra>
